<compile_context>
chip_gen: v7x
topology: tpu7x:2x2x1
jax: 0.10.0
libtpu: 0.0.40
codegen_flags: <defaults>
</compile_context>

<pallas_src>
import jax
import jax.numpy as jnp
from jax.experimental import pallas as pl
from jax.experimental.pallas import tpu as pltpu


# ----------------------------------------------------------------------------
# Primary copy path: single direct HBM -> HBM DMA.
# ----------------------------------------------------------------------------
def _dma_copy_kernel(x_hbm, o_hbm, sem):
    cp = pltpu.make_async_copy(x_hbm, o_hbm, sem)
    cp.start()
    cp.wait()


def _dma_copy(x):
    return pl.pallas_call(
        _dma_copy_kernel,
        out_shape=jax.ShapeDtypeStruct(x.shape, x.dtype),
        in_specs=[pl.BlockSpec(memory_space=pl.ANY)],
        out_specs=pl.BlockSpec(memory_space=pl.ANY),
        scratch_shapes=[pltpu.SemaphoreType.DMA],
    )(x)


# ----------------------------------------------------------------------------
# Secondary copy path: lane-dense tiled HBM->VMEM->HBM pipeline.
# ----------------------------------------------------------------------------
def _copy_kernel(x_ref, o_ref):
    o_ref[...] = x_ref[...]


# 6 MiB block; with 1 input + 1 output each depth-2 double-buffered the VMEM
# footprint is ~24 MiB.  We raise the scoped limit explicitly to 28 MiB so it
# compiles identically on v5e (16 MiB default) and stays inside v7x's 32 MiB
# scoped / 64 MiB physical budget.
_BLOCK_BYTES = 6 * 1024 * 1024
_VMEM_LIMIT_BYTES = 28 * 1024 * 1024

# Native sublane tile per element size (sub-32-bit dtypes pack along sublanes).
_SUBLANE = {4: 8, 2: 16, 1: 32}

# Lane-dense last-dim candidates (widest first keeps stores fully unmasked).
_COLS_CANDIDATES = (8192, 4096, 2048, 1024, 512, 256, 128)


def _tiled_copy_2d(slab):
    rows, cols = slab.shape
    itemsize = slab.dtype.itemsize
    sub = _SUBLANE.get(itemsize, 8)

    max_rows = max(sub, (_BLOCK_BYTES // (cols * itemsize)) // sub * sub)
    if rows <= sub:
        # Single full-extent block is always a legal tiling.
        block_rows = rows
    else:
        # Cap blocks so the grid has >= 2 steps (keeps both v7x TCs busy) and
        # round to the dtype's native sublane tile; ragged tail is masked.
        two_way = pl.cdiv(pl.cdiv(rows, 2), sub) * sub
        block_rows = max(sub, min(max_rows, two_way))
    grid = (pl.cdiv(rows, block_rows),)

    return pl.pallas_call(
        _copy_kernel,
        out_shape=jax.ShapeDtypeStruct((rows, cols), slab.dtype),
        grid=grid,
        in_specs=[pl.BlockSpec((block_rows, cols), lambda i: (i, 0))],
        out_specs=pl.BlockSpec((block_rows, cols), lambda i: (i, 0)),
        compiler_params=pltpu.CompilerParams(
            dimension_semantics=("parallel",),  # shards rows across v7x's 2 TCs
            vmem_limit_bytes=_VMEM_LIMIT_BYTES,
        ),
    )(slab)


def pallas_identity_copy(x, *, method="dma"):
    """Materialized identity: copy x into a fresh buffer with a Pallas kernel."""
    if method == "tiled":
        n = x.size
        for c in _COLS_CANDIDATES:
            if n % c == 0:
                slab = x.reshape(n // c, c)
                return _tiled_copy_2d(slab).reshape(x.shape)
        # No lane-dense factorization: fall through to the DMA path so the
        # caller still gets a real, freshly materialized buffer.
    return _dma_copy(x)


def vqa_transformer_forward(x, *, force_pallas=False, method="dma"):
    """Pallas implementation of VQATransformer.forward (identity)."""
    # The module is a true identity with no parameters: the optimal
    # implementation aliases the input (0 bytes of HBM traffic, no kernel).
    if not force_pallas:
        return x
    return pallas_identity_copy(x, method=method)


if __name__ == "__main__":
    key = jax.random.PRNGKey(0)
    k1, k2, k3 = jax.random.split(key, 3)

    # Small NCHW input consistent with an image-style VQA feature map.
    x = jax.random.normal(k1, (2, 4, 16, 16), dtype=jnp.float32)

    # Default (optimal) path: identity aliases the input.
    y_fast = vqa_transformer_forward(x)
    assert y_fast.shape == x.shape and y_fast.dtype == x.dtype
    assert bool(jnp.all(y_fast == x))

    # Forced materialized copy via the primary HBM->HBM DMA kernel.
    y_dma = jax.block_until_ready(vqa_transformer_forward(x, force_pallas=True))
    assert y_dma.shape == x.shape and y_dma.dtype == x.dtype
    assert bool(jnp.all(y_dma == x))

    # Contract fix: element count NOT a multiple of 128 still gets a real copy.
    x_odd = jax.random.normal(k2, (3, 5, 7), dtype=jnp.float32)
    y_odd = jax.block_until_ready(
        vqa_transformer_forward(x_odd, force_pallas=True)
    )
    assert y_odd.shape == x_odd.shape and y_odd.dtype == x_odd.dtype
    assert bool(jnp.all(y_odd == x_odd))

    # Secondary tiled path (dtype-aware sublane rounding, bf16 -> sublane 16).
    x_bf16 = jax.random.normal(k3, (2, 64, 128), dtype=jnp.bfloat16)
    y_tiled = jax.block_until_ready(
        vqa_transformer_forward(x_bf16, force_pallas=True, method="tiled")
    )
    assert y_tiled.shape == x_bf16.shape and y_tiled.dtype == x_bf16.dtype
    assert bool(jnp.all(y_tiled == x_bf16))

    print("KERNEL_OK")
</pallas_src>

<mosaic_0001>
module attributes {stable_mosaic.version = 11 : i64} {
  func.func @_dma_copy_kernel(%arg0: memref<2x4x16x16xf32, #tpu.memory_space<any>>, %arg1: memref<2x4x16x16xf32, #tpu.memory_space<any>>, %arg2: memref<!tpu.dma_semaphore, #tpu.memory_space<semaphore_mem>>) attributes {dimension_semantics = [], scalar_prefetch = 0 : i64, scratch_operands = 1 : i64, tpu.core_type = #tpu.core_type<tc>} {
    tpu.enqueue_dma source(%arg0 : memref<2x4x16x16xf32, #tpu.memory_space<any>>) target(%arg1 : memref<2x4x16x16xf32, #tpu.memory_space<any>>) target_semaphore(%arg2 : memref<!tpu.dma_semaphore, #tpu.memory_space<semaphore_mem>>)
    tpu.wait_dma2 semaphore(%arg2 : memref<!tpu.dma_semaphore, #tpu.memory_space<semaphore_mem>>) src(%arg0 : memref<2x4x16x16xf32, #tpu.memory_space<any>>) dst(%arg1 : memref<2x4x16x16xf32, #tpu.memory_space<any>>)
    return
  }
}

</mosaic_0001>

<bundles_post_ra>
// kernel: tpu_custom_call.1
= control target key start
LH: loop header
LB: loop body
LE: loop exit
PB: predicated region body
PF: predicated region fallthrough
CT: control target
= control target key end

     0   :  { %s36_s6 = smov [#allocation2]   ;;  %s37_s7 = smov [#allocation3]   ;;  %s55_s0 = inlined_call_operand.hbm [shape: f32[2,4,16,16], index: 0, kind: input, shape index: {}]   ;;  %s56_s1 = inlined_call_operand.hbm [shape: f32[2,4,16,16], index: 1, kind: output, shape index: {}]  }
   0x1   :  { %s38_s8 = smov 0  }
   0x2   :  { %18 = dma.general %s55_s0, 2048, %s56_s1, %s36_s6, %s37_s7, [#allocation4], %s38_s8, 0  }
   0x3   :  { %34 = dma.done.wait [#allocation2], 2048 }
   0x4   :  { %35 = vsyncadd [#allocation2], 4294965248 }
   0x5   :  { %24 = vsyncmov [#allocation2] }
   0x8   :  { %s25_s13 = vpop.sfrf %24 }
   0x9   :  { %p30_p0 = scmp.ne.s32.totalorder %s25_s13, 0 }
   0xb   :  { %29 = shalt.err (%p30_p0)  }

</bundles_post_ra>
